<compile_context>
chip_gen: v7x
topology: tpu7x:2x2x1
jax: 0.10.0
libtpu: 0.0.40
codegen_flags: <defaults>
</compile_context>

<pallas_src>
import jax
import jax.numpy as jnp
from jax.experimental import pallas as pl
from jax.experimental.pallas import tpu as pltpu

_LANE = 128
_BN_EPS = 1e-5
_NEG_INF = -1e30


def _round_up(v, m):
    return ((v + m - 1) // m) * m


def _gnn_row_tile_kernel(a_ref, h0_ref, b_ref, wfc_ref, bfc_ref, out_ref):
    # Neighborhood aggregation for this row tile: A_tile @ (X @ W_folded).
    # bf16 inputs, f32 accumulation on the MXU.
    h = jnp.dot(a_ref[...], h0_ref[...], preferred_element_type=jnp.float32)
    # Folded GCN bias + BatchNorm shift, then ReLU. Dropout(p=0.4) is identity
    # in eval mode.
    h = jnp.maximum(h + b_ref[...], 0.0)

    # Linear head on a lane-dense (hidden x 128) padded weight; padded class
    # columns carry a -1e30 bias so they vanish in the softmax.
    logits = jnp.dot(h, wfc_ref[...], preferred_element_type=jnp.float32) + bfc_ref[...]

    # Numerically stable log_softmax over dim=1 (classes).
    m = jnp.max(logits, axis=1, keepdims=True)
    z = logits - m
    lse = jnp.log(jnp.sum(jnp.exp(z), axis=1, keepdims=True))
    out_ref[...] = z - lse


def gnn_classifier_forward(x, edge_index, params, *, row_tile=128):
    """x: [N, F_in] float32, edge_index: [2, E] int32 (PyG convention)."""
    n = x.shape[0]
    hidden = params["w_gcn"].shape[1]
    out_dim = params["w_fc"].shape[1]

    # --- glue: densify + symmetric-normalize adjacency (GCN semantics) -------
    # scatter-ADD per edge (repeated edges sum, like PyG message passing) and
    # add self-loops only for nodes that do not already have one.
    a = jnp.zeros((n, n), jnp.float32).at[edge_index[1], edge_index[0]].add(1.0)
    has_self = jnp.diagonal(a) > 0.0
    a = a + jnp.diag(jnp.where(has_self, 0.0, 1.0))
    deg = jnp.sum(a, axis=1)
    d_inv_sqrt = jnp.where(deg > 0.0, jax.lax.rsqrt(deg), 0.0)
    a_norm = d_inv_sqrt[:, None] * a * d_inv_sqrt[None, :]

    # --- fold BatchNorm1d (eval, running stats) into the GCN weight/bias -----
    scale = params["bn_gamma"] * jax.lax.rsqrt(params["bn_var"] + _BN_EPS)
    w_fold = params["w_gcn"] * scale[None, :]
    b_fold = (params["b_gcn"] - params["bn_mean"]) * scale + params["bn_beta"]

    # XW computed once (tiny [N, hidden] matmul), stays resident across tiles.
    h0 = jnp.dot(x, w_fold)

    # --- pad for TPU tiling: rows to the row tile, classes to a full lane ----
    tm = min(row_tile, _round_up(n, 8))
    n_rows = _round_up(n, tm)
    c_pad = _round_up(out_dim, _LANE)

    a_p = jnp.zeros((n_rows, n), jnp.bfloat16).at[:n, :].set(
        a_norm.astype(jnp.bfloat16))
    h0_b = h0.astype(jnp.bfloat16)
    b_row = b_fold.reshape(1, hidden).astype(jnp.float32)
    wfc_p = jnp.zeros((hidden, c_pad), jnp.float32).at[:, :out_dim].set(
        params["w_fc"])
    bfc_p = jnp.full((1, c_pad), _NEG_INF, jnp.float32).at[0, :out_dim].set(
        params["b_fc"])

    out = pl.pallas_call(
        _gnn_row_tile_kernel,
        out_shape=jax.ShapeDtypeStruct((n_rows, c_pad), jnp.float32),
        grid=(pl.cdiv(n_rows, tm),),
        in_specs=[
            pl.BlockSpec((tm, n), lambda i: (i, 0)),       # A row tile (bf16)
            pl.BlockSpec((n, hidden), lambda i: (0, 0)),   # resident X @ W'
            pl.BlockSpec((1, hidden), lambda i: (0, 0)),   # folded bias
            pl.BlockSpec((hidden, c_pad), lambda i: (0, 0)),
            pl.BlockSpec((1, c_pad), lambda i: (0, 0)),
        ],
        out_specs=pl.BlockSpec((tm, c_pad), lambda i: (i, 0)),
        compiler_params=pltpu.CompilerParams(
            dimension_semantics=("parallel",),
            vmem_limit_bytes=48 * 1024 * 1024,
        ),
    )(a_p, h0_b, b_row, wfc_p, bfc_p)

    return out[:n, :out_dim]


def init_params(key, input_dim, hidden_dim, output_dim):
    k = jax.random.split(key, 6)
    return {
        "w_gcn": jax.random.normal(k[0], (input_dim, hidden_dim), jnp.float32) * 0.1,
        "b_gcn": jax.random.normal(k[1], (hidden_dim,), jnp.float32) * 0.01,
        "bn_gamma": jnp.ones((hidden_dim,), jnp.float32),
        "bn_beta": jnp.zeros((hidden_dim,), jnp.float32),
        "bn_mean": jax.random.normal(k[2], (hidden_dim,), jnp.float32) * 0.01,
        "bn_var": jnp.ones((hidden_dim,), jnp.float32)
                  + 0.01 * jax.random.uniform(k[3], (hidden_dim,), jnp.float32),
        "w_fc": jax.random.normal(k[4], (hidden_dim, output_dim), jnp.float32) * 0.1,
        "b_fc": jax.random.normal(k[5], (output_dim,), jnp.float32) * 0.01,
    }


def _reference_forward(x, edge_index, params):
    """Pure-JAX f32 reference of the PyTorch module (eval mode)."""
    n = x.shape[0]
    a = jnp.zeros((n, n), jnp.float32).at[edge_index[1], edge_index[0]].add(1.0)
    has_self = jnp.diagonal(a) > 0.0
    a = a + jnp.diag(jnp.where(has_self, 0.0, 1.0))
    deg = jnp.sum(a, axis=1)
    d_inv_sqrt = jnp.where(deg > 0.0, jax.lax.rsqrt(deg), 0.0)
    a_norm = d_inv_sqrt[:, None] * a * d_inv_sqrt[None, :]

    h = a_norm @ (x @ params["w_gcn"]) + params["b_gcn"]
    h = (h - params["bn_mean"]) * jax.lax.rsqrt(params["bn_var"] + _BN_EPS)
    h = h * params["bn_gamma"] + params["bn_beta"]
    h = jnp.maximum(h, 0.0)
    logits = h @ params["w_fc"] + params["b_fc"]
    return jax.nn.log_softmax(logits, axis=1)


if __name__ == "__main__":
    key = jax.random.PRNGKey(0)
    N, INPUT_DIM, HIDDEN_DIM, OUTPUT_DIM, E = 16, 8, 32, 4, 24

    kx, ke, kp = jax.random.split(key, 3)
    x = jax.random.normal(kx, (N, INPUT_DIM), jnp.float32)
    edge_index = jax.random.randint(ke, (2, E), 0, N, jnp.int32)
    params = init_params(kp, INPUT_DIM, HIDDEN_DIM, OUTPUT_DIM)

    # row_tile=8 -> grid=(2,) so the tiled path is exercised at toy size.
    out = gnn_classifier_forward(x, edge_index, params, row_tile=8)
    out = jax.block_until_ready(out)

    assert out.shape == (N, OUTPUT_DIM)
    # rows of log_softmax must exp-sum to 1
    row_sums = jnp.sum(jnp.exp(out), axis=1)
    assert jnp.allclose(row_sums, jnp.ones_like(row_sums), atol=1e-4)
    # match the pure-JAX f32 reference (loose tol: A / XW fed to MXU as bf16)
    ref = _reference_forward(x, edge_index, params)
    assert jnp.allclose(out, ref, atol=5e-2), float(jnp.max(jnp.abs(out - ref)))
    print("KERNEL_OK")
</pallas_src>

<mosaic_0001>
module attributes {stable_mosaic.version = 11 : i64} {
  func.func @_gnn_row_tile_kernel(%arg0: i32, %arg1: memref<8x16xbf16, #tpu.memory_space<vmem>>, %arg2: memref<16x32xbf16, #tpu.memory_space<vmem>>, %arg3: memref<1x32xf32, #tpu.memory_space<vmem>>, %arg4: memref<32x128xf32, #tpu.memory_space<vmem>>, %arg5: memref<1x128xf32, #tpu.memory_space<vmem>>, %arg6: memref<8x128xf32, #tpu.memory_space<vmem>>) attributes {dimension_semantics = [#tpu.dimension_semantics<parallel>], iteration_bounds = array<i64: 2>, scalar_prefetch = 0 : i64, scratch_operands = 0 : i64, tpu.core_type = #tpu.core_type<tc>, window_params = [{transform_indices = @transform_0, window_bounds = array<i64: 8, 16>}, {pipeline_mode = #tpu.pipeline_mode<synchronous>, transform_indices = @transform_1, window_bounds = array<i64: 16, 32>}, {pipeline_mode = #tpu.pipeline_mode<synchronous>, transform_indices = @transform_2, window_bounds = array<i64: 1, 32>}, {pipeline_mode = #tpu.pipeline_mode<synchronous>, transform_indices = @transform_3, window_bounds = array<i64: 32, 128>}, {pipeline_mode = #tpu.pipeline_mode<synchronous>, transform_indices = @transform_4, window_bounds = array<i64: 1, 128>}, {transform_indices = @transform_5, window_bounds = array<i64: 8, 128>}]} {
    %c0 = arith.constant 0 : index
    %c0_0 = arith.constant 0 : index
    %0 = vector.load %arg1[%c0, %c0_0] : memref<8x16xbf16, #tpu.memory_space<vmem>>, vector<8x16xbf16>
    %c0_1 = arith.constant 0 : index
    %c0_2 = arith.constant 0 : index
    %1 = vector.load %arg2[%c0_1, %c0_2] : memref<16x32xbf16, #tpu.memory_space<vmem>>, vector<16x32xbf16>
    %cst = arith.constant dense<0.000000e+00> : vector<8x32xf32>
    %2 = tpu.matmul %0, %1, %cst {dimension_numbers = #tpu.dot_dimension_numbers<[1], [0], [0], [1], [0, 0, 1, 1], [], []>} : vector<8x16xbf16>, vector<16x32xbf16>, vector<8x32xf32> -> vector<8x32xf32>
    %c0_3 = arith.constant 0 : index
    %c0_4 = arith.constant 0 : index
    %3 = vector.load %arg3[%c0_3, %c0_4] : memref<1x32xf32, #tpu.memory_space<vmem>>, vector<1x32xf32>
    %4 = vector.broadcast %3 : vector<1x32xf32> to vector<8x32xf32>
    %5 = arith.addf %2, %4 : vector<8x32xf32>
    %cst_5 = arith.constant 0.000000e+00 : f32
    %6 = vector.broadcast %cst_5 : f32 to vector<8x32xf32>
    %7 = arith.maximumf %5, %6 : vector<8x32xf32>
    %c0_6 = arith.constant 0 : index
    %c0_7 = arith.constant 0 : index
    %8 = vector.load %arg4[%c0_6, %c0_7] : memref<32x128xf32, #tpu.memory_space<vmem>>, vector<32x128xf32>
    %cst_8 = arith.constant dense<0.000000e+00> : vector<8x128xf32>
    %9 = tpu.matmul %7, %8, %cst_8 {dimension_numbers = #tpu.dot_dimension_numbers<[1], [0], [0], [1], [0, 0, 1, 1], [], []>} : vector<8x32xf32>, vector<32x128xf32>, vector<8x128xf32> -> vector<8x128xf32>
    %c0_9 = arith.constant 0 : index
    %c0_10 = arith.constant 0 : index
    %10 = vector.load %arg5[%c0_9, %c0_10] : memref<1x128xf32, #tpu.memory_space<vmem>>, vector<1x128xf32>
    %11 = vector.broadcast %10 : vector<1x128xf32> to vector<8x128xf32>
    %12 = arith.addf %9, %11 : vector<8x128xf32>
    %cst_11 = arith.constant dense<0xFF800000> : vector<8xf32>
    %13 = vector.multi_reduction <maximumf>, %12, %cst_11 [1] : vector<8x128xf32> to vector<8xf32>
    %14 = vector.shape_cast %13 : vector<8xf32> to vector<8x1xf32>
    %15 = vector.broadcast %14 : vector<8x1xf32> to vector<8x128xf32>
    %16 = arith.subf %12, %15 : vector<8x128xf32>
    %17 = math.exp %16 : vector<8x128xf32>
    %cst_12 = arith.constant dense<0.000000e+00> : vector<8xf32>
    %18 = vector.multi_reduction <add>, %17, %cst_12 [1] : vector<8x128xf32> to vector<8xf32>
    %19 = vector.shape_cast %18 : vector<8xf32> to vector<8x1xf32>
    %20 = math.log %19 : vector<8x1xf32>
    %21 = vector.broadcast %20 : vector<8x1xf32> to vector<8x128xf32>
    %22 = arith.subf %16, %21 : vector<8x128xf32>
    %c0_13 = arith.constant 0 : index
    %c0_14 = arith.constant 0 : index
    %23 = vector.load %arg6[%c0_13, %c0_14] : memref<8x128xf32, #tpu.memory_space<vmem>>, vector<8x128xf32>
    tpu.vector_store %arg6[%c0_13, %c0_14], %22 {strides = array<i32>} : memref<8x128xf32, #tpu.memory_space<vmem>>, vector<8x128xf32>,
    return
  }
  func.func @transform_0(%arg0: i32) -> (i32, i32) {
    %c0_i32 = arith.constant 0 : i32
    %c0_i32_0 = arith.constant 0 : i32
    return %arg0, %c0_i32 : i32, i32
  }
  func.func @transform_1(%arg0: i32) -> (i32, i32) {
    %c0_i32 = arith.constant 0 : i32
    %c0_i32_0 = arith.constant 0 : i32
    %c0_i32_1 = arith.constant 0 : i32
    return %c0_i32, %c0_i32_0 : i32, i32
  }
  func.func @transform_2(%arg0: i32) -> (i32, i32) {
    %c0_i32 = arith.constant 0 : i32
    %c0_i32_0 = arith.constant 0 : i32
    %c0_i32_1 = arith.constant 0 : i32
    return %c0_i32, %c0_i32_0 : i32, i32
  }
  func.func @transform_3(%arg0: i32) -> (i32, i32) {
    %c0_i32 = arith.constant 0 : i32
    %c0_i32_0 = arith.constant 0 : i32
    %c0_i32_1 = arith.constant 0 : i32
    return %c0_i32, %c0_i32_0 : i32, i32
  }
  func.func @transform_4(%arg0: i32) -> (i32, i32) {
    %c0_i32 = arith.constant 0 : i32
    %c0_i32_0 = arith.constant 0 : i32
    %c0_i32_1 = arith.constant 0 : i32
    return %c0_i32, %c0_i32_0 : i32, i32
  }
  func.func @transform_5(%arg0: i32) -> (i32, i32) {
    %c0_i32 = arith.constant 0 : i32
    %c0_i32_0 = arith.constant 0 : i32
    return %arg0, %c0_i32 : i32, i32
  }
}

</mosaic_0001>

<bundles_post_ra>
// kernel: tpu_custom_call.1
= control target key start
LH: loop header
LB: loop body
LE: loop exit
PB: predicated region body
PF: predicated region fallthrough
CT: control target
= control target key end

     0   :  { %10 = vsyncpa [#allocation3], 0  ;;  %s1095_s0 = inlined_call_operand.hbm [shape: bf16[16,16], index: 0, kind: input, shape index: {}]   ;;  %s1096_s1 = inlined_call_operand.hbm [shape: bf16[16,32], index: 1, kind: input, shape index: {}]   ;;  %s1097_s2 = inlined_call_operand.vmem [shape: f32[1,32], index: 2, kind: input, shape index: {}]   ;;  %s1098_s3 = inlined_call_operand.hbm [shape: f32[32,128], index: 3, kind: input, shape index: {}]   ;;  %s1099_s4 = inlined_call_operand.vmem [shape: f32[1,128], index: 4, kind: input, shape index: {}]   ;;  %s1100_s5 = inlined_call_operand.hbm [shape: f32[16,128], index: 5, kind: output, shape index: {}]  }
   0x1   :  { %12 = vsyncpa [#allocation3 + $0x1], 0 }
   0x2   :  { %13 = vsyncpa [#allocation6], 0 }
   0x3   :  { %14 = vsyncpa [#allocation4], 0 }
   0x4   :  { %16 = vsyncpa [#allocation4 + $0x1], 0  ;;  %s859_s18 = smov 0   ;;  %s861_s19 = smov 0  }
   0x5   :  { %s863_s20 = smov 0   ;;  %s865_s21 = smov 0  }
   0x6 LB: > { %s880_s22 = sadd.s32 4294967295, %s816_s21   ;;  %s530_s23 = sadd.s32 4294967294, %s816_s21   ;;  %s816_s21 = sphi %s865_s21, %s1120_s21   ;;  %s812_s20 = sphi %s863_s20, %s1119_s20   ;;  %s808_s19 = sphi %s861_s19, %s1118_s19   ;;  %s804_s18 = sphi %s859_s18, %s1117_s18  }
   0x7   : > { %p42_p0 = scmp.ne.s32.totalorder %s808_s19, %s804_s18  ;;  %p1101_p1 = scmp.eq.s32.totalorder %s880_s22, 0 }
   0x8   : > { %p156_p3 = scmp.eq.s32.totalorder %s530_s23, 1  ;;  %p531_p5 = scmp.ge.s32.totalorder %s816_s21, 1 }
   0x9   : > { %p889_p4 = por %p1101_p1, %p42_p0  ;;  %p163_p7 = scmp.lt.s32.totalorder %s816_s21, 3 }
   0xa   : > { %p894_p6 = por %p156_p3, %p42_p0  ;;  %s818_s27 = smov [#allocation5]  }
   0xb   : > { %s1104_s24 = scalar_select %p889_p4, 1, 0 }
   0xc   : > { %s1105_s25 = scalar_select %p894_p6, 1, 0 }
   0xd   : > { %p899_p8 = pnand %p531_p5, %p163_p7  ;;  %s175_s28 = sshll.u32 %s818_s27, 4  ;;  %s903_s28 = int_to_ptr.vmem [resolvable:$true] %s175_s28 }
   0xe   : > { %s819_s30 = smov [#allocation7]   ;;  %s660_s9 = scalar_lea.hbm %s1096_s1, 128 }
   0xf   : > { %p593_p9 = pneg %p899_p8  ;;  %s191_s6 = sshll.u32 %s819_s30, 4  ;;  %s914_s6 = int_to_ptr.vmem [resolvable:$true] %s191_s6 }
  0x10   : > { %p661_p12 = scmp.ne.s32.totalorder %s1096_s1, %s660_s9  ;;  %p667_p5 = scmp.lt.u32.totalorder %s660_s9, %s1096_s1 }
  0x11   : > { %p910_p11 = pnand %p593_p9, %p1101_p1 }
  0x13   : > { %p662_p13 = pneg %p910_p11 }
  0x15   : > { %p663_p0 = pnand %p662_p13, %p661_p12 }
  0x17   : > { %p664_p3 = pneg %p663_p0 }
  0x19   : > { %p669_p7 = pnand %p667_p5, %p664_p3 }
  0x1b   : > { %672 = shalt.err (!%p669_p7)
}
  0x1c   : > { %s673_s14 = scalar_lea.vmem %s903_s28, 128  ;;  %p681_p2 = scmp.lt.s32.totalorder %s903_s28, %s903_s28 }
  0x1d   : > { %p674_p9 = scmp.ne.s32.totalorder %s903_s28, %s673_s14  ;;  %p682_p12 = scmp.lt.s32.totalorder %s673_s14, %s673_s14 }
  0x1f   : > { %p676_p10 = pnand %p674_p9, %p662_p13  ;;  %p683_p0 = por %p682_p12, %p681_p2 }
  0x21   : > { %p677_p1 = pneg %p676_p10 }
  0x23   : > { %p684_p6 = pnand %p683_p0, %p677_p1 }
  0x25   : > { %687 = shalt.err (!%p684_p6)
}
  0x26   : > { %s820_s15 = smov 64   ;;  %s821_s16 = smov 4  }
  0x27   : > { %596 = dma.hbm_to_vmem [thread:$0]  (!%p910_p11), %s1096_s1, 128, %s903_s28, [#allocation6], %s820_s15, %s820_s15, %s821_s16  }
  0x28   : > { %s688_s7 = scalar_lea.hbm %s1098_s3, 512 }
  0x29   : > { %p689_p2 = scmp.ne.s32.totalorder %s1098_s3, %s688_s7  ;;  %p695_p10 = scmp.lt.u32.totalorder %s688_s7, %s1098_s3 }
  0x2b   : > { %p691_p1 = pnand %p689_p2, %p662_p13 }
  0x2d   : > { %p692_p6 = pneg %p691_p1 }
  0x2f   : > { %p697_p3 = pnand %p695_p10, %p692_p6 }
  0x31   : > { %700 = shalt.err (!%p697_p3)
}
  0x32   : > { %s701_s28 = scalar_lea.vmem %s914_s6, 512  ;;  %p709_p12 = scmp.lt.s32.totalorder %s914_s6, %s914_s6 }
  0x33   : > { %p702_p5 = scmp.ne.s32.totalorder %s914_s6, %s701_s28  ;;  %p710_p0 = scmp.lt.s32.totalorder %s701_s28, %s701_s28 }
  0x35   : > { %p704_p7 = pnand %p702_p5, %p662_p13  ;;  %p711_p2 = por %p710_p0, %p709_p12 }
  0x37   : > { %p705_p9 = pneg %p704_p7 }
  0x39   : > { %p712_p1 = pnand %p711_p2, %p705_p9 }
  0x3b   : > { %715 = shalt.err (!%p712_p1)
}
  0x3c   : > { %s822_s12 = smov 128   ;;  %s823_s13 = smov 8  }
  0x3d   : > { %599 = dma.hbm_to_vmem [thread:$0]  (!%p910_p11), %s1098_s3, 512, %s914_s6, [#allocation6], %s822_s12, %s822_s12, %s823_s13  }
  0x3e   : > { %s969_s16 = sadd.s32 1, %s816_s21   ;;  %s29_s23 = sadd.s32 1, %s812_s20 }
  0x3f   : > { %s26_s17 = ssub.s32 %s816_s21, %s969_s16  ;;  %p36_p6 = scmp.ne.s32.totalorder %s812_s20, %s808_s19 }
  0x40   : > { %p27_p13 = scmp.eq.s32.totalorder %s26_s17, 0  ;;  %p37_p10 = scmp.eq.s32.totalorder %s816_s21, 0 }
  0x41   : > { %p1108_p5 = scmp.eq.s32.totalorder %s880_s22, 1  ;;  %p610_p9 = scmp.lt.s32.totalorder %s816_s21, 2 }
  0x42   : > { %s978_s27 = scalar_select %p27_p13, %s812_s20, %s29_s23  }
  0x43   : > { %p38_p3 = por %p37_p10, %p36_p6  ;;  %p982_p7 = por %p1108_p5, %p36_p6 }
  0x44   : > { %s208_s29 = sand.u32 1, %s812_s20   ;;  %s536_s6 = sshll.u32 %s816_s21, 6 }
  0x45   : > { %s1109_s30 = scalar_select %p982_p7, 1, 0 }
  0x46   : > { %s535_s7 = sshll.u32 %s208_s29, 2  ;;  %s992_s10 = scalar_lea.hbm %s1095_s0, %s536_s6 }
  0x47   : > { %s212_s11 = scalar_lea.vmem [#allocation2], %s535_s7  ;;  %p996_p11 = pnand %p610_p9, %p38_p3 }
  0x48   : > { %s219_s28 = sshll.u32 %s212_s11, 4  ;;  %s209_s13 = scalar_lea.sflag [#allocation3], %s208_s29  ;;  %s994_s28 = int_to_ptr.vmem [resolvable:$true] %s219_s28 }
  0x49   : > { %s716_s14 = scalar_lea.hbm %s992_s10, 64  ;;  %p718_p0 = pneg %p996_p11 }
  0x4a   : > { %p717_p12 = scmp.ne.s32.totalorder %s992_s10, %s716_s14  ;;  %s721_s23 = scalar_lea.hbm %s1095_s0, 128 }
  0x4b   : > { %p722_p13 = scmp.lt.u32.totalorder %s992_s10, %s1095_s0  ;;  %p723_p6 = scmp.lt.u32.totalorder %s721_s23, %s716_s14 }
  0x4c   : > { %p719_p2 = pnand %p718_p0, %p717_p12  ;;  %p725_p3 = scmp.lt.u32.totalorder %s716_s14, %s992_s10 }
  0x4d   : > { %p724_p10 = por %p723_p6, %p722_p13 }
  0x4e   : > { %p720_p1 = pneg %p719_p2 }
  0x4f   : > { %p726_p5 = por %p725_p3, %p724_p10 }
  0x51   : > { %p727_p9 = pnand %p726_p5, %p720_p1 }
  0x53   : > { %730 = shalt.err (!%p727_p9)
}
  0x54   : > { %s731_s29 = scalar_lea.vmem %s994_s28, 64  ;;  %s824_s8 = smov [#allocation2]  }
  0x55   : > { %p732_p12 = scmp.ne.s32.totalorder %s994_s28, %s731_s29  ;;  %s736_s9 = sshll.u32 %s824_s8, 4  ;;  %s737_s9 = int_to_ptr.vmem [resolvable:$false] %s736_s9 }
  0x56   : > { %s738_s11 = scalar_lea.vmem %s737_s9, 128  ;;  %p739_p4 = scmp.lt.s32.totalorder %s994_s28, %s737_s9 }
  0x57   : > { %p734_p2 = pnand %p732_p12, %p718_p0  ;;  %p740_p13 = scmp.lt.s32.totalorder %s738_s11, %s731_s29 }
  0x59   : > { %p735_p7 = pneg %p734_p2  ;;  %p741_p6 = por %p740_p13, %p739_p4 }
  0x5b   : > { %p742_p10 = pnand %p741_p6, %p735_p7 }
  0x5d   : > { %745 = shalt.err (!%p742_p10)
}
  0x5e   : > { %603 = dma.hbm_to_vmem [thread:$0]  (!%p996_p11), %s992_s10, 64, %s994_s28, %s209_s13  }
  0x5f   : > { %228 = sbr.rel (%p899_p8) target bundleno = 870 (0x366), region = 40  ;;  %s1028_s14 = sand.u32 (!%p899_p8), 1, %s808_s19  }
  0x60   : > { %s538_s15 = sshll.u32 (!%p899_p8), %s1028_s14, 2  ;;  %s231_s17 = scalar_lea.sflag (!%p899_p8), [#allocation3], %s1028_s14 }
  0x61   : > { %s234_s23 = scalar_lea.vmem (!%p899_p8), [#allocation2], %s538_s15  ;;  %p1111_p4 = scmp.ne.s32.totalorder (!%p899_p8), %s1104_s24, 0 }
  0x66   : > { %791 = dma.done.wait (%p1111_p4), %s231_s17, 64  }
  0x67   : > { %793 = vsyncadd (%p1111_p4), %s231_s17, 4294967232  ;;  %p1112_p7 = scmp.eq.s32.totalorder %s880_s22, 0 }
  0x69   : > { %795 = dma.done.wait (%p1112_p7), [#allocation6], 640   ;;  %p1113_p11 = pmov %p1112_p7 }
  0x6a   : > { %v825_v0 = vmov 0.0   ;;  %vm826_vm0 = vmmov 0   ;;  %v827_v1 = vmov 0.0|0.0   ;;  %v655_v2 = vld [vmem:[#allocation5] sm:$0xff]   ;;  %v331_v3 = vld [vmem:[#allocation7] sm:$0xff]  ;;  %v332_v4 = vld [vmem:[#allocation7 + $0x8] sm:$0xff] }
  0x6b   : > { %797 = vsyncadd (%p1113_p11), [#allocation6], 4294966656  ;;  %558 = vmatprep.subr.bf16.mxu0 %v825_v0  ;;  %560 = vmatprep.mubr.msk.bf16.mxu0 %vm826_vm0, %v825_v0  ;;  %v270_v5 = vld [vmem:[%s234_s23] sm:$0xf]  ;;  %vm286_vm1 = vcmask 130048   ;;  %v576_v6 = vpack.c.bf16 %v332_v4, %v331_v3  ;;  %v334_v8 = vld [vmem:[#allocation7 + $0x18] sm:$0xff] }
  0x6c   : > { %575 = vmatprep.subr.bf16.mxu1 %v827_v1  ;;  %572 = vmatprep.mubr.msk.f32.mxu1 %vm826_vm0, %v825_v0  ;;  %v333_v7 = vld [vmem:[#allocation7 + $0x10] sm:$0xff]  ;;  %vm342_vm2 = vcmask 261120   ;;  %s541_s12 = sshll.u32 %s1028_s14, 3  ;;  %s548_s13 = sshll.u32 %s880_s22, 7 }
  0x6d   : > { %559 = vmatpush3.bf16.msra.mxu0 %v655_v2  ;;  %577 = vmatpush3.bf16.msra.mxu1 %v576_v6  ;;  %v579_v9 = vpack.c.bf16 %v334_v8, %v333_v7  ;;  %v542_v10 = vld [vmem:[%s1097_s2] ss:$0 sm:$0xff]  ;;  %s268_s7 = scalar_lea.vmem [#allocation8], %s541_s12  ;;  %s1051_s9 = scalar_lea.hbm %s1100_s5, %s548_s13 }
  0x6e   : > { %578 = vmatprep.subr.bf16.mxu1 %v827_v1  ;;  %v545_v17 = vld [vmem:[%s1099_s4] ss:$0 sm:$0xff]  ;;  %s441_s6 = sshll.u32 %s268_s7, 4  ;;  %s428_s11 = scalar_lea.sflag [#allocation4], %s1028_s14  ;;  %s1053_s6 = int_to_ptr.vmem [resolvable:$true] %s441_s6 }
  0x6f   : > { %s746_s15 = scalar_lea.vmem %s1053_s6, 128  ;;  %p1114_p0 = scmp.ne.s32.totalorder %s1109_s30, 0 }
  0x70   : > { %561 = vmatmul.mubr.msk.bf16.vlgmr.msra.gmra.mrb[0].mxu0 %vm286_vm1, %v270_v5  ;;  %p747_p8 = scmp.ne.s32.totalorder %s1053_s6, %s746_s15  ;;  %s828_s22 = smov [#allocation8]  }
  0x71   : > { %580 = vmatpush3.bf16.msra.mxu1 %v579_v9  ;;  %s750_s17 = sshll.u32 %s828_s22, 4  ;;  %s751_s17 = int_to_ptr.vmem [resolvable:$false] %s750_s17 }
  0x72   : > { %p748_p1 = pnand %p747_p8, %p1114_p0  ;;  %s752_s23 = scalar_lea.vmem %s751_s17, 256 }
  0x73   : > { %p753_p5 = scmp.lt.s32.totalorder %s1053_s6, %s751_s17  ;;  %p754_p9 = scmp.lt.s32.totalorder %s752_s23, %s746_s15 }
  0x74   : > { %p749_p3 = pneg %p748_p1 }
  0x75   : > { %p755_p12 = por %p754_p9, %p753_p5 }
  0x77   : > { %p756_p2 = pnand %p755_p12, %p749_p3 }
 0x143   : > { %v324_v11 = vpop.f32.mrb[0].mxu0 }
 0x144   : > { %v325_v12 = vadd.f32 %v542_v10, %v324_v11  ;;  %v562_v13 = vpop.f32.mrb[1].mxu0 }
 0x145   : > { %v327_v14 = vpop.f32.mrb[2].mxu0 }
 0x146   : > { %v330_v15 = vmax.f32 %v325_v12, 0.0  ;;  %v563_v16 = vpop.f32.mrb[3].mxu0 }
 0x148   : > { %573 = vmatmul.mubr.msk.f32.vlgmr.msra.gmra.mrb[0].mxu1 %vm342_vm2, %v330_v15 }
 0x21b   : > { %v412_v18 = vpop.f32.mrb[0].mxu1 }
 0x21c   : > { %v413_v19 = vadd.f32 %v545_v17, %v412_v18  ;;  %v574_v20 = vpop.f32.mrb[1].mxu1 }
 0x21e   : > { %416 = vmax.xlane.f32.xlu0 %v413_v19 }
 0x2ab   : > { %v417_v21 = vpop.xlane.xlu0 %416 }
 0x2ac   : > { %v418_v22 = vsub.f32 %v413_v19, %v417_v21 }
 0x2ae   : > { %v419_v23 = vmul.f32 1.442695, %v418_v22 }
 0x2b0   : > { %656 = vpow2.f32 %v419_v23 }
 0x2ba   : > { %v657_v24 = vpop.eup %656 }
 0x2bb   : > { %421 = vadd.xlane.f32.xlu0 %v657_v24 }
 0x348   : > { %v422_v25 = vpop.xlane.xlu0 %421 }
 0x349   : > { %658 = vlog2.f32 %v422_v25 }
 0x353   : > { %v659_v26 = vpop.eup %658 }
 0x354   : > { %v424_v27 = vmul.f32 0.6931472, %v659_v26 }
 0x356   : > { %v425_v28 = vsub.f32 %v418_v22, %v424_v27 }
 0x358   : > { %426 = vst [vmem:[%s268_s7] sm:$0xff] %v425_v28 }
 0x359   : > { %759 = shalt.err (!%p756_p2)
}
 0x35a   : > { %s760_s14 = scalar_lea.hbm %s1051_s9, 128  ;;  %s764_s10 = scalar_lea.hbm %s1100_s5, 256 }
 0x35b   : > { %p761_p13 = scmp.ne.s32.totalorder %s1051_s9, %s760_s14  ;;  %p765_p4 = scmp.lt.u32.totalorder %s1051_s9, %s1100_s5 }
 0x35c   : > { %p766_p7 = scmp.lt.u32.totalorder %s764_s10, %s760_s14  ;;  %p768_p8 = scmp.lt.u32.totalorder %s760_s14, %s1051_s9 }
 0x35d   : > { %p762_p6 = pnand %p761_p13, %p1114_p0 }
 0x35e   : > { %p767_p11 = por %p766_p7, %p765_p4 }
 0x35f   : > { %p763_p10 = pneg %p762_p6 }
 0x360   : > { %p769_p1 = por %p768_p8, %p767_p11 }
 0x362   : > { %p770_p3 = pnand %p769_p1, %p763_p10 }
 0x364   : > { %773 = shalt.err (!%p770_p3)
}
 0x365   : > { %591 = dma.vmem_to_hbm [thread:$0]  (%p1114_p0), %s1053_s6, 128, %s1051_s9, %s428_s11  }
 0x366 PF: > { %s453_s13 = sand.u32 1, %s804_s18   ;;  %p1115_p5 = scmp.ne.s32.totalorder %s1105_s25, 0 }
 0x367   : > { %p1116_p9 = scmp.ge.s32.totalorder %s816_s21, 2  ;;  %s454_s7 = scalar_lea.sflag [#allocation4], %s453_s13 }
 0x369   : > { %p605_p12 = pnand %p1116_p9, %p1115_p5 }
 0x36b   : > { %799 = dma.done.wait (!%p605_p12), %s454_s7, 128  }
 0x36c   : > { %801 = vsyncadd (!%p605_p12), %s454_s7, 4294967168  ;;  %p19_p2 = scmp.ge.s32.totalorder %s969_s16, 4   ;;  %s1117_s18 = smov %s808_s19 }
 0x36d   : > { %s1118_s19 = smov %s812_s20  ;;  %s1119_s20 = smov %s978_s27 }
 0x36e   : > { %s1120_s21 = smov %s969_s16  ;;  %21 = sbr.rel (!%p19_p2) target bundleno = 6 (0x6), region = 93 }
 0x375   :  { %459 = vsyncpa [#allocation3], 1 }
 0x376   :  { %461 = vsyncpa [#allocation3 + $0x1], 1 }
 0x377   :  { %462 = vsyncpa [#allocation6], 1 }
 0x378   :  { %463 = vsyncpa [#allocation4], 1 }
 0x379   :  { %465 = vsyncpa [#allocation4 + $0x1], 1 }

</bundles_post_ra>
